<compile_context>
chip_gen: v7x
topology: tpu7x:2x2x1
jax: 0.10.0
libtpu: 0.0.40
codegen_flags: <defaults>
</compile_context>

<pallas_src>
import functools

import jax
import jax.numpy as jnp
from jax.experimental import pallas as pl
from jax.experimental.pallas import tpu as pltpu


def encoder_kernel(x_ref, w_in_ref, b_in_ref, w_convs_ref, b_convs_ref,
                   scale_ref, shift_ref, o_ref, *, num_conv_layers):
    # Cast activations to the weight dtype (bf16) at the MXU input, accumulate
    # in f32 via preferred_element_type.
    x = x_ref[...].astype(w_in_ref.dtype)

    # lin_in: z = x @ W_in^T + b_in   (weights pre-transposed to [in, out])
    z = jnp.dot(x, w_in_ref[...], preferred_element_type=jnp.float32)
    z = z + b_in_ref[...]

    # Residual Linear+ReLU blocks.  Static short loop -> unrolled at trace
    # time; all intermediates live in vregs/VMEM, never touch HBM.
    for i in range(num_conv_layers):
        h = jnp.dot(z.astype(w_convs_ref.dtype), w_convs_ref[i],
                    preferred_element_type=jnp.float32)
        h = h + b_convs_ref[i]
        # TODO(synk): F.dropout in training mode (p=opt['dropout']) not applied;
        # inference semantics (identity) implemented here.
        z = z + jnp.maximum(h, 0.0)

    # Folded BatchNorm1d (eval mode): single FMA epilogue.
    o_ref[...] = (z * scale_ref[...] + shift_ref[...]).astype(o_ref.dtype)


def _pick_tm(N, tm):
    """Clamp the batch tile to a multiple of 8 and keep >=2 grid steps."""
    tm = min(tm, N)
    if tm >= 8:
        tm = (tm // 8) * 8
    # Keep at least 2 grid steps along the parallel axis when the batch allows,
    # so both v7x TensorCores receive work.
    if N > 8 and pl.cdiv(N, tm) < 2:
        tm = max(8, (((N + 1) // 2) + 7) // 8 * 8)
    return max(1, tm)


def encoder_forward(x, w_in, b_in, w_convs, b_convs, scale, shift, *, tm=256):
    N, in_dim = x.shape
    hidden = w_in.shape[1]
    L = w_convs.shape[0]

    tm = _pick_tm(N, tm)
    grid = (pl.cdiv(N, tm),)

    kernel = functools.partial(encoder_kernel, num_conv_layers=L)

    itemsize = lambda a: a.size * a.dtype.itemsize
    flops = 2 * N * (in_dim * hidden + L * hidden * hidden)
    bytes_accessed = (itemsize(x) + itemsize(w_in) + itemsize(w_convs)
                      + itemsize(b_in) + itemsize(b_convs)
                      + itemsize(scale) + itemsize(shift)
                      + N * hidden * x.dtype.itemsize)

    return pl.pallas_call(
        kernel,
        out_shape=jax.ShapeDtypeStruct((N, hidden), x.dtype),
        grid_spec=pltpu.PrefetchScalarGridSpec(
            num_scalar_prefetch=0,
            grid=grid,
            in_specs=[
                pl.BlockSpec((tm, in_dim), lambda i: (i, 0)),            # x tile
                pl.BlockSpec((in_dim, hidden), lambda i: (0, 0)),        # W_in^T (bf16), resident
                pl.BlockSpec((1, hidden), lambda i: (0, 0)),             # b_in
                pl.BlockSpec((L, hidden, hidden), lambda i: (0, 0, 0)),  # conv W^T stack (bf16), resident
                pl.BlockSpec((L, 1, hidden), lambda i: (0, 0, 0)),       # conv biases
                pl.BlockSpec((1, hidden), lambda i: (0, 0)),             # folded BN scale
                pl.BlockSpec((1, hidden), lambda i: (0, 0)),             # folded BN shift
            ],
            out_specs=pl.BlockSpec((tm, hidden), lambda i: (i, 0)),
        ),
        compiler_params=pltpu.CompilerParams(
            dimension_semantics=("parallel",),
            vmem_limit_bytes=64 * 1024 * 1024,
        ),
        cost_estimate=pl.CostEstimate(
            flops=flops, transcendentals=0, bytes_accessed=bytes_accessed),
    )(x, w_in, b_in, w_convs, b_convs, scale, shift)


def init_params(key, in_dim, hidden_dim, layers, eps=1e-5):
    """Deterministic init mimicking nn.Linear / BatchNorm1d defaults.

    Weights are returned already transposed to [in, out] and cast to bf16;
    BatchNorm is pre-folded into (scale, shift)."""
    ks = jax.random.split(key, 2 * layers + 2)
    bound = 1.0 / jnp.sqrt(in_dim)
    w_in_t = jax.random.uniform(ks[0], (in_dim, hidden_dim), jnp.float32,
                                -bound, bound).astype(jnp.bfloat16)
    b_in = jax.random.uniform(ks[1], (1, hidden_dim), jnp.float32, -bound, bound)

    L = layers - 1
    bound_h = 1.0 / jnp.sqrt(hidden_dim)
    w_convs, b_convs = [], []
    for i in range(L):
        w_convs.append(jax.random.uniform(ks[2 + 2 * i], (hidden_dim, hidden_dim),
                                          jnp.float32, -bound_h, bound_h))
        b_convs.append(jax.random.uniform(ks[3 + 2 * i], (1, hidden_dim),
                                          jnp.float32, -bound_h, bound_h))
    w_convs = jnp.stack(w_convs, axis=0).astype(jnp.bfloat16)  # (L, H, H), [in,out]
    b_convs = jnp.stack(b_convs, axis=0)                       # (L, 1, H)

    # BatchNorm1d params / running stats (deterministic, non-trivial), folded.
    gamma = jnp.ones((1, hidden_dim), jnp.float32)
    beta = jnp.zeros((1, hidden_dim), jnp.float32)
    mean = 0.1 * jnp.arange(hidden_dim, dtype=jnp.float32).reshape(1, hidden_dim)
    var = 1.0 + 0.01 * jnp.arange(hidden_dim, dtype=jnp.float32).reshape(1, hidden_dim)
    scale = gamma * jax.lax.rsqrt(var + eps)
    shift = beta - mean * scale
    return w_in_t, b_in, w_convs, b_convs, scale, shift


def reference_forward(x, w_in, b_in, w_convs, b_convs, scale, shift):
    """Pure-JAX reference with the same bf16-input / f32-accumulate matmuls."""
    z = jnp.dot(x.astype(w_in.dtype), w_in,
                preferred_element_type=jnp.float32) + b_in
    for i in range(w_convs.shape[0]):
        h = jnp.dot(z.astype(w_convs.dtype), w_convs[i],
                    preferred_element_type=jnp.float32) + b_convs[i]
        z = z + jnp.maximum(h, 0.0)
    return z * scale + shift


if __name__ == "__main__":
    # Small but lane-dense shapes: feature dims are multiples of 128; the
    # batch tile keeps 2 grid steps so both TensorCores stay busy on v7x.
    N, in_dim, hidden_dim, layers = 256, 128, 128, 3

    key = jax.random.PRNGKey(0)
    k_x, k_p = jax.random.split(key)
    x = jax.random.normal(k_x, (N, in_dim), dtype=jnp.float32)
    params = init_params(k_p, in_dim, hidden_dim, layers)

    out = encoder_forward(x, *params)
    out = jax.block_until_ready(out)

    ref = reference_forward(x, *params)
    assert out.shape == (N, hidden_dim)
    assert jnp.allclose(out, ref, atol=1e-2, rtol=1e-2), (
        float(jnp.max(jnp.abs(out - ref))))

    print("KERNEL_OK")
</pallas_src>

<mosaic_0001>
module attributes {stable_mosaic.version = 11 : i64} {
  func.func @encoder_kernel(%arg0: i32, %arg1: memref<128x128xf32, #tpu.memory_space<vmem>>, %arg2: memref<128x128xbf16, #tpu.memory_space<vmem>>, %arg3: memref<1x128xf32, #tpu.memory_space<vmem>>, %arg4: memref<2x128x128xbf16, #tpu.memory_space<vmem>>, %arg5: memref<2x1x128xf32, #tpu.memory_space<vmem>>, %arg6: memref<1x128xf32, #tpu.memory_space<vmem>>, %arg7: memref<1x128xf32, #tpu.memory_space<vmem>>, %arg8: memref<128x128xf32, #tpu.memory_space<vmem>>) attributes {dimension_semantics = [#tpu.dimension_semantics<parallel>], iteration_bounds = array<i64: 2>, scalar_prefetch = 0 : i64, scratch_operands = 0 : i64, tpu.core_type = #tpu.core_type<tc>, window_params = [{transform_indices = @transform_0, window_bounds = array<i64: 128, 128>}, {pipeline_mode = #tpu.pipeline_mode<synchronous>, transform_indices = @transform_1, window_bounds = array<i64: 128, 128>}, {pipeline_mode = #tpu.pipeline_mode<synchronous>, transform_indices = @transform_2, window_bounds = array<i64: 1, 128>}, {pipeline_mode = #tpu.pipeline_mode<synchronous>, transform_indices = @transform_3, window_bounds = array<i64: 2, 128, 128>}, {pipeline_mode = #tpu.pipeline_mode<synchronous>, transform_indices = @transform_4, window_bounds = array<i64: 2, 1, 128>}, {pipeline_mode = #tpu.pipeline_mode<synchronous>, transform_indices = @transform_5, window_bounds = array<i64: 1, 128>}, {pipeline_mode = #tpu.pipeline_mode<synchronous>, transform_indices = @transform_6, window_bounds = array<i64: 1, 128>}, {transform_indices = @transform_7, window_bounds = array<i64: 128, 128>}]} {
    %c0 = arith.constant 0 : index
    %c0_0 = arith.constant 0 : index
    %0 = vector.load %arg1[%c0, %c0_0] : memref<128x128xf32, #tpu.memory_space<vmem>>, vector<128x128xf32>
    %1 = arith.truncf %0 : vector<128x128xf32> to vector<128x128xbf16>
    %c0_1 = arith.constant 0 : index
    %c0_2 = arith.constant 0 : index
    %2 = vector.load %arg2[%c0_1, %c0_2] : memref<128x128xbf16, #tpu.memory_space<vmem>>, vector<128x128xbf16>
    %cst = arith.constant dense<0.000000e+00> : vector<128x128xf32>
    %3 = tpu.matmul %1, %2, %cst {dimension_numbers = #tpu.dot_dimension_numbers<[1], [0], [0], [1], [0, 0, 1, 1], [], []>} : vector<128x128xbf16>, vector<128x128xbf16>, vector<128x128xf32> -> vector<128x128xf32>
    %c0_3 = arith.constant 0 : index
    %c0_4 = arith.constant 0 : index
    %4 = vector.load %arg3[%c0_3, %c0_4] : memref<1x128xf32, #tpu.memory_space<vmem>>, vector<1x128xf32>
    %5 = vector.broadcast %4 : vector<1x128xf32> to vector<128x128xf32>
    %6 = arith.addf %3, %5 : vector<128x128xf32>
    %7 = arith.truncf %6 : vector<128x128xf32> to vector<128x128xbf16>
    %c0_5 = arith.constant 0 : index
    %c0_6 = arith.constant 0 : index
    %c0_7 = arith.constant 0 : index
    %8 = vector.load %arg4[%c0_5, %c0_6, %c0_7] : memref<2x128x128xbf16, #tpu.memory_space<vmem>>, vector<1x128x128xbf16>
    %9 = vector.shape_cast %8 : vector<1x128x128xbf16> to vector<128x128xbf16>
    %cst_8 = arith.constant dense<0.000000e+00> : vector<128x128xf32>
    %10 = tpu.matmul %7, %9, %cst_8 {dimension_numbers = #tpu.dot_dimension_numbers<[1], [0], [0], [1], [0, 0, 1, 1], [], []>} : vector<128x128xbf16>, vector<128x128xbf16>, vector<128x128xf32> -> vector<128x128xf32>
    %c0_9 = arith.constant 0 : index
    %c0_10 = arith.constant 0 : index
    %c0_11 = arith.constant 0 : index
    %11 = vector.load %arg5[%c0_9, %c0_10, %c0_11] : memref<2x1x128xf32, #tpu.memory_space<vmem>>, vector<1x1x128xf32>
    %12 = vector.shape_cast %11 : vector<1x1x128xf32> to vector<1x128xf32>
    %13 = vector.broadcast %12 : vector<1x128xf32> to vector<128x128xf32>
    %14 = arith.addf %10, %13 : vector<128x128xf32>
    %cst_12 = arith.constant 0.000000e+00 : f32
    %15 = vector.broadcast %cst_12 : f32 to vector<128x128xf32>
    %16 = arith.maximumf %14, %15 : vector<128x128xf32>
    %17 = arith.addf %6, %16 : vector<128x128xf32>
    %18 = arith.truncf %17 : vector<128x128xf32> to vector<128x128xbf16>
    %c1 = arith.constant 1 : index
    %c0_13 = arith.constant 0 : index
    %c0_14 = arith.constant 0 : index
    %19 = vector.load %arg4[%c1, %c0_13, %c0_14] : memref<2x128x128xbf16, #tpu.memory_space<vmem>>, vector<1x128x128xbf16>
    %20 = vector.shape_cast %19 : vector<1x128x128xbf16> to vector<128x128xbf16>
    %cst_15 = arith.constant dense<0.000000e+00> : vector<128x128xf32>
    %21 = tpu.matmul %18, %20, %cst_15 {dimension_numbers = #tpu.dot_dimension_numbers<[1], [0], [0], [1], [0, 0, 1, 1], [], []>} : vector<128x128xbf16>, vector<128x128xbf16>, vector<128x128xf32> -> vector<128x128xf32>
    %c1_16 = arith.constant 1 : index
    %c0_17 = arith.constant 0 : index
    %c0_18 = arith.constant 0 : index
    %22 = vector.load %arg5[%c1_16, %c0_17, %c0_18] : memref<2x1x128xf32, #tpu.memory_space<vmem>>, vector<1x1x128xf32>
    %23 = vector.shape_cast %22 : vector<1x1x128xf32> to vector<1x128xf32>
    %24 = vector.broadcast %23 : vector<1x128xf32> to vector<128x128xf32>
    %25 = arith.addf %21, %24 : vector<128x128xf32>
    %cst_19 = arith.constant 0.000000e+00 : f32
    %26 = vector.broadcast %cst_19 : f32 to vector<128x128xf32>
    %27 = arith.maximumf %25, %26 : vector<128x128xf32>
    %28 = arith.addf %17, %27 : vector<128x128xf32>
    %c0_20 = arith.constant 0 : index
    %c0_21 = arith.constant 0 : index
    %29 = vector.load %arg6[%c0_20, %c0_21] : memref<1x128xf32, #tpu.memory_space<vmem>>, vector<1x128xf32>
    %30 = vector.broadcast %29 : vector<1x128xf32> to vector<128x128xf32>
    %31 = arith.mulf %28, %30 : vector<128x128xf32>
    %c0_22 = arith.constant 0 : index
    %c0_23 = arith.constant 0 : index
    %32 = vector.load %arg7[%c0_22, %c0_23] : memref<1x128xf32, #tpu.memory_space<vmem>>, vector<1x128xf32>
    %33 = vector.broadcast %32 : vector<1x128xf32> to vector<128x128xf32>
    %34 = arith.addf %31, %33 : vector<128x128xf32>
    %c0_24 = arith.constant 0 : index
    %c0_25 = arith.constant 0 : index
    %35 = vector.load %arg8[%c0_24, %c0_25] : memref<128x128xf32, #tpu.memory_space<vmem>>, vector<128x128xf32>
    tpu.vector_store %arg8[%c0_24, %c0_25], %34 {strides = array<i32>} : memref<128x128xf32, #tpu.memory_space<vmem>>, vector<128x128xf32>,
    return
  }
  func.func @transform_0(%arg0: i32) -> (i32, i32) {
    %c0_i32 = arith.constant 0 : i32
    %c0_i32_0 = arith.constant 0 : i32
    return %arg0, %c0_i32 : i32, i32
  }
  func.func @transform_1(%arg0: i32) -> (i32, i32) {
    %c0_i32 = arith.constant 0 : i32
    %c0_i32_0 = arith.constant 0 : i32
    %c0_i32_1 = arith.constant 0 : i32
    return %c0_i32, %c0_i32_0 : i32, i32
  }
  func.func @transform_2(%arg0: i32) -> (i32, i32) {
    %c0_i32 = arith.constant 0 : i32
    %c0_i32_0 = arith.constant 0 : i32
    %c0_i32_1 = arith.constant 0 : i32
    return %c0_i32, %c0_i32_0 : i32, i32
  }
  func.func @transform_3(%arg0: i32) -> (i32, i32, i32) {
    %c0_i32 = arith.constant 0 : i32
    %c0_i32_0 = arith.constant 0 : i32
    %c0_i32_1 = arith.constant 0 : i32
    %c0_i32_2 = arith.constant 0 : i32
    return %c0_i32, %c0_i32_0, %c0_i32_1 : i32, i32, i32
  }
  func.func @transform_4(%arg0: i32) -> (i32, i32, i32) {
    %c0_i32 = arith.constant 0 : i32
    %c0_i32_0 = arith.constant 0 : i32
    %c0_i32_1 = arith.constant 0 : i32
    %c0_i32_2 = arith.constant 0 : i32
    return %c0_i32, %c0_i32_0, %c0_i32_1 : i32, i32, i32
  }
  func.func @transform_5(%arg0: i32) -> (i32, i32) {
    %c0_i32 = arith.constant 0 : i32
    %c0_i32_0 = arith.constant 0 : i32
    %c0_i32_1 = arith.constant 0 : i32
    return %c0_i32, %c0_i32_0 : i32, i32
  }
  func.func @transform_6(%arg0: i32) -> (i32, i32) {
    %c0_i32 = arith.constant 0 : i32
    %c0_i32_0 = arith.constant 0 : i32
    %c0_i32_1 = arith.constant 0 : i32
    return %c0_i32, %c0_i32_0 : i32, i32
  }
  func.func @transform_7(%arg0: i32) -> (i32, i32) {
    %c0_i32 = arith.constant 0 : i32
    %c0_i32_0 = arith.constant 0 : i32
    return %arg0, %c0_i32 : i32, i32
  }
}

</mosaic_0001>

<bundles_post_ra>
// kernel: tpu_custom_call.1
= control target key start
LH: loop header
LB: loop body
LE: loop exit
PB: predicated region body
PF: predicated region fallthrough
CT: control target
= control target key end

     0   :  { %12 = vsyncpa [#allocation3], 0  ;;  %s2454_s0 = inlined_call_operand.hbm [shape: f32[256,128], index: 0, kind: input, shape index: {}]   ;;  %s2455_s1 = inlined_call_operand.hbm [shape: bf16[128,128], index: 1, kind: input, shape index: {}]   ;;  %s2456_s2 = inlined_call_operand.hbm [shape: f32[1,128], index: 2, kind: input, shape index: {}]   ;;  %s2457_s3 = inlined_call_operand.hbm [shape: bf16[2,128,128], index: 3, kind: input, shape index: {}]   ;;  %s2458_s4 = inlined_call_operand.hbm [shape: f32[2,1,128], index: 4, kind: input, shape index: {}]   ;;  %s2459_s5 = inlined_call_operand.hbm [shape: f32[1,128], index: 5, kind: input, shape index: {}]   ;;  %s2460_s6 = inlined_call_operand.hbm [shape: f32[1,128], index: 6, kind: input, shape index: {}]   ;;  %s2461_s7 = inlined_call_operand.hbm [shape: f32[256,128], index: 7, kind: output, shape index: {}]  }
   0x1   :  { %14 = vsyncpa [#allocation3 + $0x1], 0 }
   0x2   :  { %15 = vsyncpa [#allocation6], 0 }
   0x3   :  { %16 = vsyncpa [#allocation9], 0 }
   0x4   :  { %17 = vsyncpa [#allocation12], 0 }
   0x5   :  { %18 = vsyncpa [#allocation4], 0 }
   0x6   :  { %20 = vsyncpa [#allocation4 + $0x1], 0  ;;  %s1887_s24 = smov 0   ;;  %s1889_s25 = smov 0  }
   0x7   :  { %s1891_s26 = smov 0   ;;  %s1893_s27 = smov 0  }
   0x8 LB: > { %s1831_s28 = smov [#allocation5]   ;;  %s1908_s30 = sadd.s32 4294967295, %s1829_s27   ;;  %s1829_s27 = sphi %s1893_s27, %s2487_s27   ;;  %s1825_s26 = sphi %s1891_s26, %s2486_s26   ;;  %s1821_s25 = sphi %s1889_s25, %s2485_s25   ;;  %s1817_s24 = sphi %s1887_s24, %s2484_s24  }
   0x9   : > { %s221_s29 = sshll.u32 %s1831_s28, 4  ;;  %p1198_p0 = scmp.ge.s32.totalorder %s1829_s27, 1  ;;  %s1913_s29 = int_to_ptr.vmem [resolvable:$true] %s221_s29 }
   0xa   : > { %p2462_p1 = scmp.eq.s32.totalorder %s1908_s30, 0  ;;  %p209_p2 = scmp.lt.s32.totalorder %s1829_s27, 3 }
   0xb   : > { %s1832_s9 = smov [#allocation8]   ;;  %s1833_s12 = smov [#allocation11]  }
   0xc   : > { %p1915_p3 = pnand %p1198_p0, %p209_p2  ;;  %s245_s10 = sshll.u32 %s1832_s9, 4  ;;  %s1928_s10 = int_to_ptr.vmem [resolvable:$true] %s245_s10 }
   0xd   : > { %s272_s13 = sshll.u32 %s1833_s12, 4  ;;  %s1553_s16 = scalar_lea.hbm %s2455_s1, 1024  ;;  %s1930_s13 = int_to_ptr.vmem [resolvable:$true] %s272_s13 }
   0xe   : > { %s2465_s8 = scalar_select %p1915_p3, 1, 0 }
   0xf   : > { %p1442_p5 = pneg %p1915_p3  ;;  %p1554_p7 = scmp.ne.s32.totalorder %s2455_s1, %s1553_s16 }
  0x10   : > { %p1560_p11 = scmp.lt.u32.totalorder %s1553_s16, %s2455_s1 }
  0x11   : > { %p1924_p6 = pnand %p1442_p5, %p2462_p1 }
  0x13   : > { %p1940_p8 = pneg %p1924_p6 }
  0x15   : > { %p1556_p9 = pnand %p1940_p8, %p1554_p7 }
  0x17   : > { %p1557_p10 = pneg %p1556_p9 }
  0x19   : > { %p1562_p12 = pnand %p1560_p11, %p1557_p10 }
  0x1b   : > { %1565 = shalt.err (!%p1562_p12)
}
  0x1c   : > { %s1566_s22 = scalar_lea.vmem %s1913_s29, 1024  ;;  %p1574_p5 = scmp.lt.s32.totalorder %s1913_s29, %s1913_s29 }
  0x1d   : > { %p1567_p13 = scmp.ne.s32.totalorder %s1913_s29, %s1566_s22  ;;  %p1575_p4 = scmp.lt.s32.totalorder %s1566_s22, %s1566_s22 }
  0x1f   : > { %p1569_p0 = pnand %p1567_p13, %p1940_p8  ;;  %p1576_p7 = por %p1575_p4, %p1574_p5 }
  0x21   : > { %p1570_p2 = pneg %p1569_p0 }
  0x23   : > { %p1577_p9 = pnand %p1576_p7, %p1570_p2 }
  0x25   : > { %1580 = shalt.err (!%p1577_p9)
}
  0x26   : > { %s1834_s23 = smov 64   ;;  %s1835_s28 = smov 4  }
  0x27   : > { %1445 = dma.hbm_to_vmem [thread:$0]  (!%p1924_p6), %s2455_s1, 1024, %s1913_s29, [#allocation6], %s1834_s23, %s1834_s23, %s1835_s28  }
  0x28   : > { %s1581_s16 = scalar_lea.hbm %s2457_s3, 2048 }
  0x29   : > { %p1582_p4 = scmp.ne.s32.totalorder %s2457_s3, %s1581_s16  ;;  %p1588_p12 = scmp.lt.u32.totalorder %s1581_s16, %s2457_s3 }
  0x2b   : > { %p1584_p10 = pnand %p1582_p4, %p1940_p8 }
  0x2d   : > { %p1585_p11 = pneg %p1584_p10 }
  0x2f   : > { %p1590_p13 = pnand %p1588_p12, %p1585_p11 }
  0x31   : > { %1593 = shalt.err (!%p1590_p13)
}
  0x32   : > { %s1594_s29 = scalar_lea.vmem %s1928_s10, 2048  ;;  %p1602_p7 = scmp.lt.s32.totalorder %s1928_s10, %s1928_s10 }
  0x33   : > { %p1595_p0 = scmp.ne.s32.totalorder %s1928_s10, %s1594_s29  ;;  %p1603_p9 = scmp.lt.s32.totalorder %s1594_s29, %s1594_s29 }
  0x35   : > { %p1597_p2 = pnand %p1595_p0, %p1940_p8  ;;  %p1604_p4 = por %p1603_p9, %p1602_p7 }
  0x37   : > { %p1598_p5 = pneg %p1597_p2 }
  0x39   : > { %p1605_p10 = pnand %p1604_p4, %p1598_p5 }
  0x3b   : > { %1608 = shalt.err (!%p1605_p10)
}
  0x3c   : > { %1451 = dma.hbm_to_vmem [thread:$0]  (!%p1924_p6), %s2457_s3, 2048, %s1928_s10, [#allocation9], %s1834_s23, %s1834_s23, %s1835_s28  }
  0x3d   : > { %s1609_s15 = scalar_lea.hbm %s2459_s5, 16 }
  0x3e   : > { %p1610_p11 = scmp.ne.s32.totalorder %s2459_s5, %s1609_s15  ;;  %p1616_p0 = scmp.lt.u32.totalorder %s1609_s15, %s2459_s5 }
  0x40   : > { %p1612_p12 = pnand %p1610_p11, %p1940_p8 }
  0x42   : > { %p1613_p13 = pneg %p1612_p12 }
  0x44   : > { %p1618_p2 = pnand %p1616_p0, %p1613_p13 }
  0x46   : > { %1621 = shalt.err (!%p1618_p2)
}
  0x47   : > { %s1622_s10 = scalar_lea.vmem %s1930_s13, 16  ;;  %s1629_s23 = scalar_lea.vmem %s1930_s13, 32 }
  0x48   : > { %p1623_p5 = scmp.ne.s32.totalorder %s1930_s13, %s1622_s10  ;;  %p1630_p4 = scmp.lt.s32.totalorder %s1930_s13, %s1930_s13 }
  0x49   : > { %p1631_p10 = scmp.lt.s32.totalorder %s1629_s23, %s1622_s10 }
  0x4a   : > { %p1625_p7 = pnand %p1623_p5, %p1940_p8 }
  0x4b   : > { %p1632_p11 = por %p1631_p10, %p1630_p4 }
  0x4c   : > { %p1626_p9 = pneg %p1625_p7 }
  0x4e   : > { %p1633_p12 = pnand %p1632_p11, %p1626_p9 }
  0x50   : > { %1636 = shalt.err (!%p1633_p12)
}
  0x51   : > { %1457 = dma.hbm_to_vmem [thread:$0]  (!%p1924_p6), %s2459_s5, 16, %s1930_s13, [#allocation12]  }
  0x52   : > { %s1836_s29 = smov [#allocation7]   ;;  %s1837_s9 = smov [#allocation10]  }
  0x53   : > { %s235_s22 = sshll.u32 %s1836_s29, 4  ;;  %s258_s12 = sshll.u32 %s1837_s9, 4  ;;  %s236_s22 = int_to_ptr.vmem [resolvable:$true] %s235_s22  ;;  %s259_s12 = int_to_ptr.vmem [resolvable:$true] %s258_s12 }
  0x54   : > { %s1637_s16 = scalar_lea.hbm %s2456_s2, 16 }
  0x55   : > { %p1638_p13 = scmp.ne.s32.totalorder %s2456_s2, %s1637_s16  ;;  %p1644_p5 = scmp.lt.u32.totalorder %s1637_s16, %s2456_s2 }
  0x57   : > { %p1640_p0 = pnand %p1638_p13, %p1940_p8 }
  0x59   : > { %p1641_p2 = pneg %p1640_p0 }
  0x5b   : > { %p1646_p7 = pnand %p1644_p5, %p1641_p2 }
  0x5d   : > { %1649 = shalt.err (!%p1646_p7)
}
  0x5e   : > { %s1650_s13 = scalar_lea.vmem %s236_s22, 16  ;;  %s1657_s23 = scalar_lea.vmem %s236_s22, 32 }
  0x5f   : > { %p1651_p9 = scmp.ne.s32.totalorder %s236_s22, %s1650_s13  ;;  %p1658_p11 = scmp.lt.s32.totalorder %s236_s22, %s236_s22 }
  0x60   : > { %p1659_p12 = scmp.lt.s32.totalorder %s1657_s23, %s1650_s13 }
  0x61   : > { %p1653_p4 = pnand %p1651_p9, %p1940_p8 }
  0x62   : > { %p1660_p1 = por %p1659_p12, %p1658_p11 }
  0x63   : > { %p1654_p10 = pneg %p1653_p4 }
  0x65   : > { %p1661_p3 = pnand %p1660_p1, %p1654_p10 }
  0x67   : > { %1664 = shalt.err (!%p1661_p3)
}
  0x68   : > { %1448 = dma.hbm_to_vmem [thread:$0]  (!%p1924_p6), %s2456_s2, 16, %s236_s22, [#allocation6]  }
  0x69   : > { %s1665_s14 = scalar_lea.hbm %s2458_s4, 32 }
  0x6a   : > { %p1666_p13 = scmp.ne.s32.totalorder %s2458_s4, %s1665_s14  ;;  %p1672_p3 = scmp.lt.u32.totalorder %s1665_s14, %s2458_s4 }
  0x6c   : > { %p1668_p0 = pnand %p1666_p13, %p1940_p8 }
  0x6e   : > { %p1669_p1 = pneg %p1668_p0 }
  0x70   : > { %p1674_p2 = pnand %p1672_p3, %p1669_p1 }
  0x72   : > { %1677 = shalt.err (!%p1674_p2)
}
  0x73   : > { %s1678_s20 = scalar_lea.vmem %s259_s12, 32  ;;  %p1686_p4 = scmp.lt.s32.totalorder %s259_s12, %s259_s12 }
  0x74   : > { %p1679_p5 = scmp.ne.s32.totalorder %s259_s12, %s1678_s20  ;;  %p1687_p10 = scmp.lt.s32.totalorder %s1678_s20, %s1678_s20 }
  0x76   : > { %p1681_p7 = pnand %p1679_p5, %p1940_p8  ;;  %p1688_p11 = por %p1687_p10, %p1686_p4 }
  0x78   : > { %p1682_p9 = pneg %p1681_p7 }
  0x7a   : > { %p1689_p12 = pnand %p1688_p11, %p1682_p9 }
  0x7c   : > { %1692 = shalt.err (!%p1689_p12)
}
  0x7d   : > { %s1838_s22 = smov 16   ;;  %s1839_s10 = smov 1  }
  0x7e   : > { %1454 = dma.hbm_to_vmem [thread:$0]  (!%p1924_p6), %s2458_s4, 32, %s259_s12, [#allocation9], %s1838_s22, %s1838_s22, %s1839_s10  }
  0x7f   : > { %s1840_s28 = smov [#allocation13]   ;;  %s1693_s14 = scalar_lea.hbm %s2460_s6, 16 }
  0x80   : > { %s283_s21 = sshll.u32 %s1840_s28, 4  ;;  %p1694_p13 = scmp.ne.s32.totalorder %s2460_s6, %s1693_s14  ;;  %s284_s21 = int_to_ptr.vmem [resolvable:$true] %s283_s21 }
  0x81   : > { %p1700_p3 = scmp.lt.u32.totalorder %s1693_s14, %s2460_s6 }
  0x82   : > { %p1696_p0 = pnand %p1694_p13, %p1940_p8 }
  0x84   : > { %p1697_p1 = pneg %p1696_p0 }
  0x86   : > { %p1702_p2 = pnand %p1700_p3, %p1697_p1 }
  0x88   : > { %1705 = shalt.err (!%p1702_p2)
}
  0x89   : > { %s1706_s12 = scalar_lea.vmem %s284_s21, 16  ;;  %s1713_s20 = scalar_lea.vmem %s284_s21, 32 }
  0x8a   : > { %p1707_p5 = scmp.ne.s32.totalorder %s284_s21, %s1706_s12  ;;  %p1714_p4 = scmp.lt.s32.totalorder %s284_s21, %s284_s21 }
  0x8b   : > { %p1715_p10 = scmp.lt.s32.totalorder %s1713_s20, %s1706_s12 }
  0x8c   : > { %p1709_p7 = pnand %p1707_p5, %p1940_p8 }
  0x8d   : > { %p1716_p11 = por %p1715_p10, %p1714_p4 }
  0x8e   : > { %p1710_p9 = pneg %p1709_p7 }
  0x90   : > { %p1717_p12 = pnand %p1716_p11, %p1710_p9 }
  0x92   : > { %1720 = shalt.err (!%p1717_p12)
}
  0x93   : > { %1460 = dma.hbm_to_vmem [thread:$0]  (!%p1924_p6), %s2460_s6, 16, %s284_s21, [#allocation12]  }
  0x94   : > { %s1197_s19 = sadd.s32 4294967294, %s1829_s27   ;;  %s2064_s11 = sadd.s32 1, %s1829_s27  }
  0x95   : > { %s30_s13 = ssub.s32 %s1829_s27, %s2064_s11  ;;  %s33_s23 = sadd.s32 1, %s1825_s26 }
  0x96   : > { %p31_p8 = scmp.eq.s32.totalorder %s30_s13, 0  ;;  %p40_p13 = scmp.ne.s32.totalorder %s1825_s26, %s1821_s25 }
  0x97   : > { %p41_p0 = scmp.eq.s32.totalorder %s1829_s27, 0  ;;  %p46_p1 = scmp.ne.s32.totalorder %s1821_s25, %s1817_s24 }
  0x98   : > { %s2075_s28 = scalar_select %p31_p8, %s1825_s26, %s33_s23  }
  0x99   : > { %p2077_p3 = por %p41_p0, %p40_p13  ;;  %p2469_p2 = scmp.eq.s32.totalorder %s1908_s30, 0 }
  0x9a   : > { %p196_p5 = scmp.eq.s32.totalorder %s1908_s30, 1  ;;  %p202_p7 = scmp.eq.s32.totalorder %s1197_s19, 1 }
  0x9b   : > { %p2083_p6 = por %p2469_p2, %p46_p1  ;;  %p1475_p9 = scmp.lt.s32.totalorder %s1829_s27, 2 }
  0x9c   : > { %s294_s9 = sand.u32 1, %s1825_s26   ;;  %p2090_p4 = por %p196_p5, %p40_p13 }
  0x9d   : > { %p2094_p10 = por %p202_p7, %p46_p1  ;;  %s1206_s16 = sshll.u32 %s294_s9, 7 }
  0x9e   : > { %s2471_s14 = scalar_select %p2090_p4, 1, 0 }
  0x9f   : > { %s2472_s15 = scalar_select %p2094_p10, 1, 0 }
  0xa0   : > { %s1252_s17 = sshll.u32 %s1829_s27, 11  ;;  %s298_s22 = scalar_lea.vmem [#allocation2], %s1206_s16 }
  0xa1   : > { %s2102_s20 = scalar_lea.hbm %s2454_s0, %s1252_s17  ;;  %s305_s10 = sshll.u32 %s298_s22, 4  ;;  %s2104_s10 = int_to_ptr.vmem [resolvable:$true] %s305_s10 }
  0xa2   : > { %p2108_p11 = pnand %p1475_p9, %p2077_p3  ;;  %s2112_s13 = scalar_lea.sflag [#allocation3], %s294_s9 }
  0xa3   : > { %s1721_s23 = scalar_lea.hbm %s2102_s20, 2048  ;;  %s1726_s29 = scalar_lea.hbm %s2454_s0, 4096 }
  0xa4   : > { %p1722_p12 = scmp.ne.s32.totalorder %s2102_s20, %s1721_s23  ;;  %p1723_p8 = pneg %p2108_p11 }
  0xa5   : > { %p1727_p1 = scmp.lt.u32.totalorder %s2102_s20, %s2454_s0  ;;  %p1728_p3 = scmp.lt.u32.totalorder %s1726_s29, %s1721_s23 }
  0xa6   : > { %p1724_p13 = pnand %p1723_p8, %p1722_p12  ;;  %p1730_p5 = scmp.lt.u32.totalorder %s1721_s23, %s2102_s20 }
  0xa7   : > { %p1729_p2 = por %p1728_p3, %p1727_p1 }
  0xa8   : > { %p1725_p0 = pneg %p1724_p13 }
  0xa9   : > { %p1731_p7 = por %p1730_p5, %p1729_p2 }
  0xab   : > { %p1732_p9 = pnand %p1731_p7, %p1725_p0 }
  0xad   : > { %1735 = shalt.err (!%p1732_p9)
}
  0xae   : > { %s1736_s9 = scalar_lea.vmem %s2104_s10, 2048  ;;  %s1841_s22 = smov [#allocation2]  }
  0xaf   : > { %p1737_p12 = scmp.ne.s32.totalorder %s2104_s10, %s1736_s9  ;;  %s1741_s16 = sshll.u32 %s1841_s22, 4  ;;  %s1742_s16 = int_to_ptr.vmem [resolvable:$false] %s1741_s16 }
  0xb0   : > { %s1743_s17 = scalar_lea.vmem %s1742_s16, 4096  ;;  %p1744_p4 = scmp.lt.s32.totalorder %s2104_s10, %s1742_s16 }
  0xb1   : > { %p1739_p13 = pnand %p1737_p12, %p1723_p8  ;;  %p1745_p1 = scmp.lt.s32.totalorder %s1743_s17, %s1736_s9 }
  0xb3   : > { %p1740_p10 = pneg %p1739_p13  ;;  %p1746_p3 = por %p1745_p1, %p1744_p4 }
  0xb5   : > { %p1747_p2 = pnand %p1746_p3, %p1740_p10 }
  0xb7   : > { %1750 = shalt.err (!%p1747_p2)
}
  0xb8   : > { %s1842_s23 = smov 128   ;;  %s1843_s29 = smov 8  }
  0xb9   : > { %1464 = dma.hbm_to_vmem [thread:$0]  (!%p2108_p11), %s2102_s20, 2048, %s2104_s10, %s2112_s13, %s1842_s23, %s1842_s23, %s1843_s29  }
  0xba   : > { %p2474_p8 = scmp.ne.s32.totalorder %s2465_s8, 0 }
  0xbb   : > { %s2143_s18 = sand.u32 (!%p2474_p8), 1, %s1821_s25  }
  0xbc   : > { %317 = sbr.rel (%p2474_p8) target bundleno = 947 (0x3b3), region = 48  ;;  %s1210_s12 = sshll.u32 (!%p2474_p8), %s2143_s18, 7 }
  0xbd   : > { %s320_s9 = scalar_lea.sflag (!%p2474_p8), [#allocation3], %s2143_s18  ;;  %s2149_s22 = scalar_lea.vmem (!%p2474_p8), [#allocation2], %s1210_s12 }
  0xc3   : > { %1796 = dma.done.wait (%p2083_p6), %s320_s9, 2048  }
  0xc4   : > { %1798 = vsyncadd (%p2083_p6), %s320_s9, 4294965248  ;;  %p2475_p4 = scmp.eq.s32.totalorder %s1908_s30, 0 }
  0xc6   : > { %1800 = dma.done.wait (%p2475_p4), [#allocation6], 1040   ;;  %p2476_p10 = pmov %p2475_p4 }
  0xc7   : > { %p2477_p11 = pmov %p2475_p4 }
  0xc8   : > { %1802 = vsyncadd (%p2476_p10), [#allocation6], 4294966256 }
  0xc9   : > { %1804 = dma.done.wait (%p2477_p11), [#allocation9], 2080   ;;  %p2478_p0 = pmov %p2475_p4 }
  0xcb   : > { %1806 = vsyncadd (%p2478_p0), [#allocation9], 4294965216  ;;  %p2479_p5 = pmov %p2478_p0 }
  0xcc   : > { %p2480_p7 = pmov %p2478_p0 }
  0xcd   : > { %1808 = dma.done.wait (%p2479_p5), [#allocation12], 32  }
  0xce   : > { %1810 = vsyncadd (%p2480_p7), [#allocation12], 4294967264  ;;  %v1529_v0 = vld [vmem:[#allocation5] sm:$0xff]   ;;  %v1530_v1 = vld [vmem:[#allocation5 + $0x8] sm:$0xff]   ;;  %s2337_s8 = scalar_lea.vmem [#allocation14], %s1210_s12  ;;  %s1253_s21 = sshll.u32 %s1908_s30, 11 }
  0xcf   : > { %1302 = vmatprep.subr.bf16.mxu0 %v1529_v0  ;;  %v1531_v2 = vld [vmem:[#allocation5 + $0x10] sm:$0xff]   ;;  %v1532_v3 = vld [vmem:[#allocation5 + $0x18] sm:$0xff]   ;;  %v381_v4 = vld [vmem:[%s2149_s22] sm:$0xff]  ;;  %s1067_s20 = sshll.u32 %s2337_s8, 4  ;;  %s2404_s13 = scalar_lea.hbm %s2461_s7, %s1253_s21  ;;  %s2406_s20 = int_to_ptr.vmem [resolvable:$true] %s1067_s20 }
  0xd0   : > { %1303 = vmatpush3.bf16.msra.mxu0 %v1529_v0  ;;  %v382_v5 = vld [vmem:[%s2149_s22 + $0x8] sm:$0xff]  ;;  %v1533_v7 = vld [vmem:[#allocation5 + $0x20] sm:$0xff]   ;;  %v1539_v11 = vld [vmem:[#allocation8 + $0x10] sm:$0xff]   ;;  %s1054_s30 = scalar_lea.sflag [#allocation4], %s2143_s18  ;;  %s1751_s16 = scalar_lea.vmem %s2406_s20, 2048 }
  0xd1   : > { %1304 = vmatprep.subr.bf16.mxu0 %v1530_v1  ;;  %v397_v6 = vpack.c.bf16 %v382_v5, %v381_v4  ;;  %v1537_v8 = vld [vmem:[#allocation8] sm:$0xff]   ;;  %v1538_v9 = vld [vmem:[#allocation8 + $0x8] sm:$0xff]   ;;  %v1540_v13 = vld [vmem:[#allocation8 + $0x18] sm:$0xff]   ;;  %p1752_p6 = scmp.ne.s32.totalorder %s2406_s20, %s1751_s16  ;;  %p2481_p9 = scmp.ne.s32.totalorder %s2471_s14, 0 }
  0xd2   : > { %v1534_v10 = vld [vmem:[#allocation5 + $0x28] sm:$0xff]   ;;  %1334 = vmatprep.subr.bf16.mxu1 %v1537_v8  ;;  %v1535_v12 = vld [vmem:[#allocation5 + $0x30] sm:$0xff]   ;;  %v1536_v14 = vld [vmem:[#allocation5 + $0x38] sm:$0xff]   ;;  %s1844_s17 = smov [#allocation14]  }
  0xd3   : > { %1318 = vmatprep.mubr.bf16.mxu0 %v397_v6  ;;  %1335 = vmatpush3.bf16.msra.mxu1 %v1537_v8  ;;  %v1541_v15 = vld [vmem:[#allocation8 + $0x20] sm:$0xff]   ;;  %v383_v16 = vld [vmem:[%s2149_s22 + $0x10] sm:$0xff]  ;;  %v384_v17 = vld [vmem:[%s2149_s22 + $0x18] sm:$0xff]  ;;  %p1753_p12 = pnand %p1752_p6, %p2481_p9  ;;  %s1755_s23 = sshll.u32 %s1844_s17, 4  ;;  %s1756_s23 = int_to_ptr.vmem [resolvable:$false] %s1755_s23 }
  0xd4   : > { %1305 = vmatpush3.bf16.msra.mxu0 %v1530_v1  ;;  %1336 = vmatprep.subr.bf16.mxu1 %v1538_v9  ;;  %v385_v18 = vld [vmem:[%s2149_s22 + $0x20] sm:$0xff]  ;;  %v386_v19 = vld [vmem:[%s2149_s22 + $0x28] sm:$0xff]  ;;  %v398_v20 = vpack.c.bf16 %v384_v17, %v383_v16  ;;  %v387_v23 = vld [vmem:[%s2149_s22 + $0x30] sm:$0xff]  ;;  %s1757_s29 = scalar_lea.vmem %s1756_s23, 4096  ;;  %p1758_p1 = scmp.lt.s32.totalorder %s2406_s20, %s1756_s23 }
  0xd5   : > { %1306 = vmatprep.subr.bf16.mxu0 %v1531_v2  ;;  %v1542_v21 = vld [vmem:[#allocation8 + $0x28] sm:$0xff]   ;;  %v399_v22 = vpack.c.bf16 %v386_v19, %v385_v18  ;;  %v388_v24 = vld [vmem:[%s2149_s22 + $0x38] sm:$0xff]  ;;  %v389_v25 = vld [vmem:[%s2149_s22 + $0x40] sm:$0xff]  ;;  %p1754_p13 = pneg %p1753_p12  ;;  %p1759_p3 = scmp.lt.s32.totalorder %s1757_s29, %s1751_s16 }
  0xd6   : > { %v390_v26 = vld [vmem:[%s2149_s22 + $0x48] sm:$0xff]  ;;  %v400_v27 = vpack.c.bf16 %v388_v24, %v387_v23  ;;  %v391_v29 = vld [vmem:[%s2149_s22 + $0x50] sm:$0xff]  ;;  %v392_v30 = vld [vmem:[%s2149_s22 + $0x58] sm:$0xff] }
  0xd7   : > { %1337 = vmatpush3.bf16.msra.mxu1 %v1538_v9  ;;  %v401_v28 = vpack.c.bf16 %v390_v26, %v389_v25  ;;  %v393_v31 = vld [vmem:[%s2149_s22 + $0x60] sm:$0xff]  ;;  %v394_v32 = vld [vmem:[%s2149_s22 + $0x68] sm:$0xff]  ;;  %v402_v33 = vpack.c.bf16 %v392_v30, %v391_v29  ;;  %v395_v35 = vld [vmem:[%s2149_s22 + $0x70] sm:$0xff]  ;;  %p1760_p2 = por %p1759_p3, %p1758_p1 }
  0xd8   : > { %1307 = vmatpush3.bf16.msra.mxu0 %v1531_v2  ;;  %1338 = vmatprep.subr.bf16.mxu1 %v1539_v11  ;;  %v403_v34 = vpack.c.bf16 %v394_v32, %v393_v31  ;;  %v396_v36 = vld [vmem:[%s2149_s22 + $0x78] sm:$0xff]  ;;  %v1545_v40 = vld [vmem:[#allocation8 + $0x40] sm:$0xff]   ;;  %v1546_v41 = vld [vmem:[#allocation8 + $0x48] sm:$0xff]  }
  0xd9   : > { %1308 = vmatprep.subr.bf16.mxu0 %v1532_v3  ;;  %v404_v37 = vpack.c.bf16 %v396_v36, %v395_v35  ;;  %v1543_v38 = vld [vmem:[#allocation8 + $0x30] sm:$0xff]   ;;  %v1544_v39 = vld [vmem:[#allocation8 + $0x38] sm:$0xff]   ;;  %v1549_v44 = vld [vmem:[#allocation8 + $0x60] sm:$0xff]   ;;  %p1761_p8 = pnand %p1760_p2, %p1754_p13 }
  0xda   : > { %v1547_v42 = vld [vmem:[#allocation8 + $0x50] sm:$0xff]   ;;  %v1548_v43 = vld [vmem:[#allocation8 + $0x58] sm:$0xff]   ;;  %v2231_v25 = vld [vmem:[#allocation10] ss:$0 sm:$0xff] }
  0xdb   : > { %1339 = vmatpush3.bf16.msra.mxu1 %v1539_v11  ;;  %v1218_v46 = vld [vmem:[#allocation7] ss:$0 sm:$0xff]  ;;  %v1551_v23 = vld [vmem:[#allocation8 + $0x70] sm:$0xff]  }
  0xdc   : > { %1309 = vmatpush3.bf16.msra.mxu0 %v1532_v3  ;;  %1340 = vmatprep.subr.bf16.mxu1 %v1540_v13  ;;  %v1552_v24 = vld [vmem:[#allocation8 + $0x78] sm:$0xff]  }
  0xdd   : > { %1310 = vmatprep.subr.bf16.mxu0 %v1533_v7 }
  0xdf   : > { %1341 = vmatpush3.bf16.msra.mxu1 %v1540_v13 }
  0xe0   : > { %1311 = vmatpush3.bf16.msra.mxu0 %v1533_v7  ;;  %1342 = vmatprep.subr.bf16.mxu1 %v1541_v15 }
  0xe1   : > { %1312 = vmatprep.subr.bf16.mxu0 %v1534_v10 }
  0xe3   : > { %1343 = vmatpush3.bf16.msra.mxu1 %v1541_v15 }
  0xe4   : > { %1313 = vmatpush3.bf16.msra.mxu0 %v1534_v10  ;;  %1344 = vmatprep.subr.bf16.mxu1 %v1542_v21 }
  0xe5   : > { %1314 = vmatprep.subr.bf16.mxu0 %v1535_v12 }
  0xe7   : > { %1345 = vmatpush3.bf16.msra.mxu1 %v1542_v21 }
  0xe8   : > { %1315 = vmatpush3.bf16.msra.mxu0 %v1535_v12  ;;  %1346 = vmatprep.subr.bf16.mxu1 %v1543_v38 }
  0xe9   : > { %1316 = vmatprep.subr.bf16.mxu0 %v1536_v14 }
  0xeb   : > { %1347 = vmatpush3.bf16.msra.mxu1 %v1543_v38 }
  0xec   : > { %1317 = vmatpush3.bf16.msra.mxu0 %v1536_v14  ;;  %1348 = vmatprep.subr.bf16.mxu1 %v1544_v39 }
  0xed   : > { %1366 = vmatprep.subr.bf16.mxu0 %v1545_v40 }
  0xef   : > { %1319 = vmatmul.mubr.bf16.vlgmr.msra.gmra.mrb[0].mxu0 %v398_v20  ;;  %1349 = vmatpush3.bf16.msra.mxu1 %v1544_v39 }
  0xf0   : > { %1322 = vmatprep.mubr.bf16.mxu0 %v399_v22  ;;  %1398 = vmatprep.subr.bf16.mxu1 %v1545_v40  ;;  %v1550_v22 = vld [vmem:[#allocation8 + $0x68] sm:$0xff]  }
  0xf1   : > { %1367 = vmatpush3.bf16.msra.mxu0 %v1545_v40 }
  0xf2   : > { %1368 = vmatprep.subr.bf16.mxu0 %v1546_v41 }
  0xf5   : > { %1369 = vmatpush3.bf16.msra.mxu0 %v1546_v41 }
  0xf6   : > { %1370 = vmatprep.subr.bf16.mxu0 %v1547_v42 }
  0xf7   : > { %1323 = vmatmul.mubr.bf16.gmra.mrb[4].mxu0 %v400_v27 }
  0xf8   : > { %1326 = vmatprep.mubr.bf16.mxu0 %v401_v28 }
  0xf9   : > { %1371 = vmatpush3.bf16.msra.mxu0 %v1547_v42 }
  0xfa   : > { %1372 = vmatprep.subr.bf16.mxu0 %v1548_v43 }
  0xfd   : > { %1373 = vmatpush3.bf16.msra.mxu0 %v1548_v43 }
  0xfe   : > { %1374 = vmatprep.subr.bf16.mxu0 %v1549_v44 }
  0xff   : > { %1327 = vmatmul.mubr.bf16.gmra.mrb[8].mxu0 %v402_v33 }
 0x100   : > { %1330 = vmatprep.mubr.bf16.mxu0 %v403_v34 }
 0x101   : > { %1375 = vmatpush3.bf16.msra.mxu0 %v1549_v44 }
 0x102   : > { %1376 = vmatprep.subr.bf16.mxu0 %v1550_v22 }
 0x105   : > { %1377 = vmatpush3.bf16.msra.mxu0 %v1550_v22 }
 0x106   : > { %1378 = vmatprep.subr.bf16.mxu0 %v1551_v23 }
 0x107   : > { %1331 = vmatmul.mubr.bf16.gmra.mrb[12].mxu0 %v404_v37 }
 0x109   : > { %1379 = vmatpush3.bf16.msra.mxu0 %v1551_v23 }
 0x10a   : > { %1380 = vmatprep.subr.bf16.mxu0 %v1552_v24 }
 0x10d   : > { %1381 = vmatpush3.bf16.msra.mxu0 %v1552_v24 }
 0x1c2   : > { %v1320_v45 = vpop.f32.mrb[0].mxu0 }
 0x1c3   : > { %v510_v47 = vpop.f32.mrb[1].mxu0  ;;  %v2189_v53 = vadd.f32 %v1320_v45, %v1218_v46 }
 0x1c4   : > { %v1321_v48 = vpop.f32.mrb[2].mxu0  ;;  %v2185_v51 = vadd.f32 %v1218_v46, %v510_v47 }
 0x1c5   : > { %v2183_v49 = vadd.f32 %v1321_v48, %v1218_v46  ;;  %v513_v50 = vpop.f32.mrb[3].mxu0 }
 0x1c6   : > { %v2187_v52 = vadd.f32 %v1218_v46, %v513_v50 }
 0x1c7   : > { %v574_v55 = vpack.c.bf16 %v2183_v49, %v2189_v53 }
 0x1c8   : > { %v573_v54 = vpack.c.bf16 %v2187_v52, %v2185_v51 }
 0x1ca   : > { %v1324_v56 = vpop.f32.mrb[4].mxu0  ;;  %1350 = vmatprep.mubr.bf16.mxu1 %v573_v54 }
 0x1cb   : > { %v526_v57 = vpop.f32.mrb[5].mxu0  ;;  %1351 = vmatmul.mubr.bf16.vlgmr.msra.gmra.mrb[0].mxu1 %v574_v55  ;;  %v2201_v63 = vadd.f32 %v1324_v56, %v1218_v46 }
 0x1cc   : > { %v1325_v58 = vpop.f32.mrb[6].mxu0  ;;  %1406 = vmatpush3.bf16.msra.mxu1 %v1545_v40  ;;  %v2197_v61 = vadd.f32 %v1218_v46, %v526_v57 }
 0x1cd   : > { %v2195_v59 = vadd.f32 %v1325_v58, %v1218_v46  ;;  %v529_v60 = vpop.f32.mrb[7].mxu0  ;;  %1399 = vmatprep.subr.bf16.mxu1 %v1546_v41 }
 0x1ce   : > { %v2199_v62 = vadd.f32 %v1218_v46, %v529_v60 }
 0x1cf   : > { %v576_v1 = vpack.c.bf16 %v2195_v59, %v2201_v63 }
 0x1d0   : > { %v575_v0 = vpack.c.bf16 %v2199_v62, %v2197_v61  ;;  %1407 = vmatpush3.bf16.msra.mxu1 %v1546_v41 }
 0x1d1   : > { %1400 = vmatprep.subr.bf16.mxu1 %v1547_v42 }
 0x1d2   : > { %v1328_v2 = vpop.f32.mrb[8].mxu0  ;;  %1354 = vmatprep.mubr.bf16.mxu1 %v575_v0 }
 0x1d3   : > { %v542_v3 = vpop.f32.mrb[9].mxu0  ;;  %1355 = vmatmul.mubr.bf16.gmra.mrb[4].mxu1 %v576_v1  ;;  %v2213_v9 = vadd.f32 %v1328_v2, %v1218_v46 }
 0x1d4   : > { %v1329_v4 = vpop.f32.mrb[10].mxu0  ;;  %1408 = vmatpush3.bf16.msra.mxu1 %v1547_v42  ;;  %v2209_v7 = vadd.f32 %v1218_v46, %v542_v3 }
 0x1d5   : > { %v2207_v5 = vadd.f32 %v1329_v4, %v1218_v46  ;;  %v545_v6 = vpop.f32.mrb[11].mxu0  ;;  %1401 = vmatprep.subr.bf16.mxu1 %v1548_v43 }
 0x1d6   : > { %v2211_v8 = vadd.f32 %v1218_v46, %v545_v6 }
 0x1d7   : > { %v578_v11 = vpack.c.bf16 %v2207_v5, %v2213_v9 }
 0x1d8   : > { %v577_v10 = vpack.c.bf16 %v2211_v8, %v2209_v7  ;;  %1409 = vmatpush3.bf16.msra.mxu1 %v1548_v43 }
 0x1d9   : > { %1402 = vmatprep.subr.bf16.mxu1 %v1549_v44 }
 0x1da   : > { %v1332_v12 = vpop.f32.mrb[12].mxu0  ;;  %1358 = vmatprep.mubr.bf16.mxu1 %v577_v10 }
 0x1db   : > { %v558_v13 = vpop.f32.mrb[13].mxu0  ;;  %1359 = vmatmul.mubr.bf16.gmra.mrb[8].mxu1 %v578_v11  ;;  %v2225_v19 = vadd.f32 %v1332_v12, %v1218_v46 }
 0x1dc   : > { %v1333_v14 = vpop.f32.mrb[14].mxu0  ;;  %1410 = vmatpush3.bf16.msra.mxu1 %v1549_v44  ;;  %v2221_v17 = vadd.f32 %v1218_v46, %v558_v13 }
 0x1dd   : > { %v2219_v15 = vadd.f32 %v1333_v14, %v1218_v46  ;;  %v561_v16 = vpop.f32.mrb[15].mxu0  ;;  %1403 = vmatprep.subr.bf16.mxu1 %v1550_v22 }
 0x1de   : > { %v2223_v18 = vadd.f32 %v1218_v46, %v561_v16 }
 0x1df   : > { %v580_v21 = vpack.c.bf16 %v2219_v15, %v2225_v19 }
 0x1e0   : > { %v579_v20 = vpack.c.bf16 %v2223_v18, %v2221_v17  ;;  %1411 = vmatpush3.bf16.msra.mxu1 %v1550_v22 }
 0x1e1   : > { %1404 = vmatprep.subr.bf16.mxu1 %v1551_v23 }
 0x1e2   : > { %1362 = vmatprep.mubr.bf16.mxu1 %v579_v20 }
 0x1e3   : > { %1363 = vmatmul.mubr.bf16.gmra.mrb[12].mxu1 %v580_v21 }
 0x1e4   : > { %1412 = vmatpush3.bf16.msra.mxu1 %v1551_v23 }
 0x1e5   : > { %1405 = vmatprep.subr.bf16.mxu1 %v1552_v24 }
 0x1e8   : > { %1413 = vmatpush3.bf16.msra.mxu1 %v1552_v24 }
 0x29e   : > { %v1352_v26 = vpop.f32.mrb[0].mxu1 }
 0x29f   : > { %v695_v27 = vadd.f32 %v1352_v26, %v2231_v25  ;;  %v686_v28 = vpop.f32.mrb[1].mxu1 }
 0x2a0   : > { %v687_v29 = vadd.f32 %v2231_v25, %v686_v28  ;;  %v1353_v30 = vpop.f32.mrb[2].mxu1 }
 0x2a1   : > { %v698_v31 = vadd.f32 %v1353_v30, %v2231_v25  ;;  %v689_v32 = vpop.f32.mrb[3].mxu1  ;;  %v751_v35 = vmax.f32 %v695_v27, 0.0 }
 0x2a2   : > { %v749_v33 = vmax.f32 %v687_v29, 0.0  ;;  %v690_v34 = vadd.f32 %v2231_v25, %v689_v32 }
 0x2a3   : > { %v752_v36 = vmax.f32 %v698_v31, 0.0  ;;  %v2247_v42 = vadd.f32 %v751_v35, %v2189_v53 }
 0x2a4   : > { %v750_v37 = vmax.f32 %v690_v34, 0.0  ;;  %v2241_v39 = vadd.f32 %v749_v33, %v2185_v51 }
 0x2a5   : > { %v2238_v38 = vadd.f32 %v752_v36, %v2183_v49 }
 0x2a6   : > { %v2244_v40 = vadd.f32 %v750_v37, %v2187_v52  ;;  %v1356_v41 = vpop.f32.mrb[4].mxu1 }
 0x2a7   : > { %v711_v43 = vadd.f32 %v1356_v41, %v2231_v25  ;;  %v702_v44 = vpop.f32.mrb[5].mxu1  ;;  %v782_v48 = vpack.c.bf16 %v2238_v38, %v2247_v42  ;;  %v2313_v41 = vld [vmem:[#allocation10 + $0x1] ss:$0 sm:$0xff] }
 0x2a8   : > { %v703_v45 = vadd.f32 %v2231_v25, %v702_v44  ;;  %v1357_v46 = vpop.f32.mrb[6].mxu1  ;;  %v781_v47 = vpack.c.bf16 %v2244_v40, %v2241_v39 }
 0x2a9   : > { %v714_v49 = vadd.f32 %v1357_v46, %v2231_v25  ;;  %v705_v50 = vpop.f32.mrb[7].mxu1  ;;  %v755_v53 = vmax.f32 %v711_v43, 0.0 }
 0x2aa   : > { %v753_v51 = vmax.f32 %v703_v45, 0.0  ;;  %v706_v52 = vadd.f32 %v2231_v25, %v705_v50  ;;  %1382 = vmatprep.mubr.bf16.mxu0 %v781_v47  ;;  %v2318_v47 = vld [vmem:[#allocation11] ss:$0 sm:$0xff] }
 0x2ab   : > { %v756_v54 = vmax.f32 %v714_v49, 0.0  ;;  %1383 = vmatmul.mubr.bf16.vlgmr.msra.gmra.mrb[16].mxu0 %v782_v48  ;;  %v2267_v0 = vadd.f32 %v755_v53, %v2201_v63 }
 0x2ac   : > { %v754_v55 = vmax.f32 %v706_v52, 0.0  ;;  %v2261_v57 = vadd.f32 %v753_v51, %v2197_v61  ;;  %v2322_v52 = vld [vmem:[#allocation13] ss:$0 sm:$0xff] }
 0x2ad   : > { %v2258_v56 = vadd.f32 %v756_v54, %v2195_v59 }
 0x2ae   : > { %v2264_v58 = vadd.f32 %v754_v55, %v2199_v62  ;;  %v1360_v60 = vpop.f32.mrb[8].mxu1 }
 0x2af   : > { %v727_v1 = vadd.f32 %v1360_v60, %v2231_v25  ;;  %v718_v2 = vpop.f32.mrb[9].mxu1  ;;  %v784_v62 = vpack.c.bf16 %v2258_v56, %v2267_v0 }
 0x2b0   : > { %v719_v3 = vadd.f32 %v2231_v25, %v718_v2  ;;  %v1361_v4 = vpop.f32.mrb[10].mxu1  ;;  %v783_v59 = vpack.c.bf16 %v2264_v58, %v2261_v57 }
 0x2b1   : > { %v730_v6 = vadd.f32 %v1361_v4, %v2231_v25  ;;  %v721_v61 = vpop.f32.mrb[11].mxu1  ;;  %v759_v63 = vmax.f32 %v727_v1, 0.0 }
 0x2b2   : > { %v757_v10 = vmax.f32 %v719_v3, 0.0  ;;  %v722_v11 = vadd.f32 %v2231_v25, %v721_v61  ;;  %1386 = vmatprep.mubr.bf16.mxu0 %v783_v59 }
 0x2b3   : > { %v760_v12 = vmax.f32 %v730_v6, 0.0  ;;  %1387 = vmatmul.mubr.bf16.gmra.mrb[20].mxu0 %v784_v62  ;;  %v2287_v22 = vadd.f32 %v759_v63, %v2213_v9 }
 0x2b4   : > { %v758_v13 = vmax.f32 %v722_v11, 0.0  ;;  %v2281_v16 = vadd.f32 %v757_v10, %v2209_v7 }
 0x2b5   : > { %v2278_v14 = vadd.f32 %v760_v12, %v2207_v5 }
 0x2b6   : > { %v2284_v20 = vadd.f32 %v758_v13, %v2211_v8  ;;  %v1364_v21 = vpop.f32.mrb[12].mxu1 }
 0x2b7   : > { %v743_v23 = vadd.f32 %v1364_v21, %v2231_v25  ;;  %v734_v24 = vpop.f32.mrb[13].mxu1  ;;  %v786_v7 = vpack.c.bf16 %v2278_v14, %v2287_v22 }
 0x2b8   : > { %v735_v26 = vadd.f32 %v2231_v25, %v734_v24  ;;  %v1365_v27 = vpop.f32.mrb[14].mxu1  ;;  %v785_v5 = vpack.c.bf16 %v2284_v20, %v2281_v16 }
 0x2b9   : > { %v746_v28 = vadd.f32 %v1365_v27, %v2231_v25  ;;  %v737_v8 = vpop.f32.mrb[15].mxu1  ;;  %v763_v9 = vmax.f32 %v743_v23, 0.0 }
 0x2ba   : > { %v761_v29 = vmax.f32 %v735_v26, 0.0  ;;  %v738_v30 = vadd.f32 %v2231_v25, %v737_v8  ;;  %1390 = vmatprep.mubr.bf16.mxu1 %v785_v5 }
 0x2bb   : > { %v764_v31 = vmax.f32 %v746_v28, 0.0  ;;  %1391 = vmatmul.mubr.bf16.vlgmr.msra.gmra.mrb[16].mxu1 %v786_v7  ;;  %v2307_v36 = vadd.f32 %v763_v9, %v2225_v19 }
 0x2bc   : > { %v762_v32 = vmax.f32 %v738_v30, 0.0  ;;  %v2301_v34 = vadd.f32 %v761_v29, %v2221_v17 }
 0x2bd   : > { %v2298_v33 = vadd.f32 %v764_v31, %v2219_v15 }
 0x2be   : > { %v2304_v35 = vadd.f32 %v762_v32, %v2223_v18 }
 0x2bf   : > { %v788_v37 = vpack.c.bf16 %v2298_v33, %v2307_v36 }
 0x2c0   : > { %v787_v25 = vpack.c.bf16 %v2304_v35, %v2301_v34 }
 0x2c2   : > { %1394 = vmatprep.mubr.bf16.mxu1 %v787_v25 }
 0x2c3   : > { %1395 = vmatmul.mubr.bf16.gmra.mrb[20].mxu1 %v788_v37 }
 0x37e   : > { %v1384_v15 = vpop.f32.mrb[16].mxu0 }
 0x37f   : > { %v905_v17 = vadd.f32 %v1384_v15, %v2313_v41  ;;  %v896_v43 = vpop.f32.mrb[17].mxu0 }
 0x380   : > { %v897_v18 = vadd.f32 %v2313_v41, %v896_v43  ;;  %v1385_v44 = vpop.f32.mrb[18].mxu0 }
 0x381   : > { %v961_v45 = vmax.f32 %v905_v17, 0.0  ;;  %v908_v19 = vadd.f32 %v1385_v44, %v2313_v41  ;;  %v899_v46 = vpop.f32.mrb[19].mxu0 }
 0x382   : > { %v959_v48 = vmax.f32 %v897_v18, 0.0  ;;  %v900_v49 = vadd.f32 %v2313_v41, %v899_v46 }
 0x383   : > { %v977_v50 = vadd.f32 %v961_v45, %v2247_v42  ;;  %v962_v51 = vmax.f32 %v908_v19, 0.0 }
 0x384   : > { %v975_v53 = vadd.f32 %v959_v48, %v2241_v39  ;;  %v960_v54 = vmax.f32 %v900_v49, 0.0 }
 0x385   : > { %v1000_v55 = vmul.f32 %v2318_v47, %v977_v50  ;;  %v978_v60 = vadd.f32 %v962_v51, %v2238_v38 }
 0x386   : > { %v998_v1 = vmul.f32 %v2318_v47, %v975_v53  ;;  %v976_v2 = vadd.f32 %v960_v54, %v2244_v40  ;;  %v1388_v3 = vpop.f32.mrb[20].mxu0 }
 0x387   : > { %v1023_v4 = vadd.f32 %v2322_v52, %v1000_v55  ;;  %v1001_v42 = vmul.f32 %v2318_v47, %v978_v60  ;;  %v921_v59 = vadd.f32 %v1388_v3, %v2313_v41  ;;  %v912_v6 = vpop.f32.mrb[21].mxu0 }
 0x388   : > { %v1021_v61 = vadd.f32 %v2322_v52, %v998_v1  ;;  %v999_v39 = vmul.f32 %v2318_v47, %v976_v2  ;;  %v913_v62 = vadd.f32 %v2313_v41, %v912_v6  ;;  %v1389_v10 = vpop.f32.mrb[22].mxu0 }
 0x389   : > { %1039 = vst [vmem:[%s2337_s8 + $0x10] sm:$0xff] %v1023_v4  ;;  %v1024_v38 = vadd.f32 %v2322_v52, %v1001_v42  ;;  %v965_v40 = vmax.f32 %v921_v59, 0.0  ;;  %v924_v11 = vadd.f32 %v1389_v10, %v2313_v41  ;;  %v915_v63 = vpop.f32.mrb[23].mxu0 }
 0x38a   : > { %1037 = vst [vmem:[%s2337_s8] sm:$0xff] %v1021_v61  ;;  %v1022_v12 = vadd.f32 %v2322_v52, %v999_v39  ;;  %v963_v13 = vmax.f32 %v913_v62, 0.0  ;;  %v916_v21 = vadd.f32 %v2313_v41, %v915_v63 }
 0x38b   : > { %1040 = vst [vmem:[%s2337_s8 + $0x18] sm:$0xff] %v1024_v38  ;;  %v981_v23 = vadd.f32 %v965_v40, %v2267_v0  ;;  %v966_v24 = vmax.f32 %v924_v11, 0.0 }
 0x38c   : > { %1038 = vst [vmem:[%s2337_s8 + $0x8] sm:$0xff] %v1022_v12  ;;  %v979_v26 = vadd.f32 %v963_v13, %v2261_v57  ;;  %v964_v27 = vmax.f32 %v916_v21, 0.0 }
 0x38d   : > { %v1004_v5 = vmul.f32 %v2318_v47, %v981_v23  ;;  %v982_v7 = vadd.f32 %v966_v24, %v2258_v56 }
 0x38e   : > { %v1002_v28 = vmul.f32 %v2318_v47, %v979_v26  ;;  %v980_v8 = vadd.f32 %v964_v27, %v2264_v58  ;;  %v1392_v29 = vpop.f32.mrb[16].mxu1 }
 0x38f   : > { %v1027_v30 = vadd.f32 %v2322_v52, %v1004_v5  ;;  %v1005_v0 = vmul.f32 %v2318_v47, %v982_v7  ;;  %v937_v9 = vadd.f32 %v1392_v29, %v2313_v41  ;;  %v928_v31 = vpop.f32.mrb[17].mxu1 }
 0x390   : > { %v1025_v57 = vadd.f32 %v2322_v52, %v1002_v28  ;;  %v1003_v32 = vmul.f32 %v2318_v47, %v980_v8  ;;  %v929_v56 = vadd.f32 %v2313_v41, %v928_v31  ;;  %v1393_v25 = vpop.f32.mrb[18].mxu1 }
 0x391   : > { %1043 = vst [vmem:[%s2337_s8 + $0x30] sm:$0xff] %v1027_v30  ;;  %v1028_v58 = vadd.f32 %v2322_v52, %v1005_v0  ;;  %v969_v37 = vmax.f32 %v937_v9, 0.0  ;;  %v940_v15 = vadd.f32 %v1393_v25, %v2313_v41  ;;  %v931_v17 = vpop.f32.mrb[19].mxu1 }
 0x392   : > { %1041 = vst [vmem:[%s2337_s8 + $0x20] sm:$0xff] %v1025_v57  ;;  %v1026_v43 = vadd.f32 %v2322_v52, %v1003_v32  ;;  %v967_v18 = vmax.f32 %v929_v56, 0.0  ;;  %v932_v44 = vadd.f32 %v2313_v41, %v931_v17 }
 0x393   : > { %1044 = vst [vmem:[%s2337_s8 + $0x38] sm:$0xff] %v1028_v58  ;;  %v985_v45 = vadd.f32 %v969_v37, %v2287_v22  ;;  %v970_v19 = vmax.f32 %v940_v15, 0.0 }
 0x394   : > { %1042 = vst [vmem:[%s2337_s8 + $0x28] sm:$0xff] %v1026_v43  ;;  %v983_v46 = vadd.f32 %v967_v18, %v2281_v16  ;;  %v968_v48 = vmax.f32 %v932_v44, 0.0 }
 0x395   : > { %v1008_v49 = vmul.f32 %v2318_v47, %v985_v45  ;;  %v986_v50 = vadd.f32 %v970_v19, %v2278_v14 }
 0x396   : > { %v1006_v51 = vmul.f32 %v2318_v47, %v983_v46  ;;  %v984_v53 = vadd.f32 %v968_v48, %v2284_v20  ;;  %v1396_v54 = vpop.f32.mrb[20].mxu1 }
 0x397   : > { %v1031_v55 = vadd.f32 %v2322_v52, %v1008_v49  ;;  %v1009_v22 = vmul.f32 %v2318_v47, %v986_v50  ;;  %v953_v60 = vadd.f32 %v1396_v54, %v2313_v41  ;;  %v944_v1 = vpop.f32.mrb[21].mxu1 }
 0x398   : > { %v1029_v16 = vadd.f32 %v2322_v52, %v1006_v51  ;;  %v1007_v2 = vmul.f32 %v2318_v47, %v984_v53  ;;  %v945_v14 = vadd.f32 %v2313_v41, %v944_v1  ;;  %v1397_v3 = vpop.f32.mrb[22].mxu1 }
 0x399   : > { %1047 = vst [vmem:[%s2337_s8 + $0x50] sm:$0xff] %v1031_v55  ;;  %v1032_v20 = vadd.f32 %v2322_v52, %v1009_v22  ;;  %v973_v4 = vmax.f32 %v953_v60, 0.0  ;;  %v956_v42 = vadd.f32 %v1397_v3, %v2313_v41  ;;  %v947_v59 = vpop.f32.mrb[23].mxu1 }
 0x39a   : > { %1045 = vst [vmem:[%s2337_s8 + $0x40] sm:$0xff] %v1029_v16  ;;  %v1030_v6 = vadd.f32 %v2322_v52, %v1007_v2  ;;  %v971_v61 = vmax.f32 %v945_v14, 0.0  ;;  %v948_v39 = vadd.f32 %v2313_v41, %v947_v59 }
 0x39b   : > { %1048 = vst [vmem:[%s2337_s8 + $0x58] sm:$0xff] %v1032_v20  ;;  %v989_v62 = vadd.f32 %v973_v4, %v2307_v36  ;;  %v974_v10 = vmax.f32 %v956_v42, 0.0 }
 0x39c   : > { %1046 = vst [vmem:[%s2337_s8 + $0x48] sm:$0xff] %v1030_v6  ;;  %v987_v38 = vadd.f32 %v971_v61, %v2301_v34  ;;  %v972_v40 = vmax.f32 %v948_v39, 0.0 }
 0x39d   : > { %v1012_v11 = vmul.f32 %v2318_v47, %v989_v62  ;;  %v990_v63 = vadd.f32 %v974_v10, %v2298_v33 }
 0x39e   : > { %v1010_v12 = vmul.f32 %v2318_v47, %v987_v38  ;;  %v988_v41 = vadd.f32 %v972_v40, %v2304_v35 }
 0x39f   : > { %v1035_v36 = vadd.f32 %v2322_v52, %v1012_v11  ;;  %v1013_v34 = vmul.f32 %v2318_v47, %v990_v63 }
 0x3a0   : > { %v1033_v13 = vadd.f32 %v2322_v52, %v1010_v12  ;;  %v1011_v21 = vmul.f32 %v2318_v47, %v988_v41 }
 0x3a1   : > { %1051 = vst [vmem:[%s2337_s8 + $0x70] sm:$0xff] %v1035_v36  ;;  %v1036_v33 = vadd.f32 %v2322_v52, %v1013_v34 }
 0x3a2   : > { %1049 = vst [vmem:[%s2337_s8 + $0x60] sm:$0xff] %v1033_v13  ;;  %v1034_v35 = vadd.f32 %v2322_v52, %v1011_v21 }
 0x3a3   : > { %1052 = vst [vmem:[%s2337_s8 + $0x78] sm:$0xff] %v1036_v33 }
 0x3a4   : > { %1050 = vst [vmem:[%s2337_s8 + $0x68] sm:$0xff] %v1034_v35 }
 0x3a5   : > { %1764 = shalt.err (!%p1761_p8)
}
 0x3a6   : > { %s1765_s12 = scalar_lea.hbm %s2404_s13, 2048  ;;  %s1769_s8 = scalar_lea.hbm %s2461_s7, 4096 }
 0x3a7   : > { %p1766_p4 = scmp.ne.s32.totalorder %s2404_s13, %s1765_s12  ;;  %p1770_p0 = scmp.lt.u32.totalorder %s2404_s13, %s2461_s7 }
 0x3a8   : > { %p1771_p5 = scmp.lt.u32.totalorder %s1769_s8, %s1765_s12  ;;  %p1773_p6 = scmp.lt.u32.totalorder %s1765_s12, %s2404_s13 }
 0x3a9   : > { %p1767_p10 = pnand %p1766_p4, %p2481_p9 }
 0x3aa   : > { %p1772_p7 = por %p1771_p5, %p1770_p0 }
 0x3ab   : > { %p1768_p11 = pneg %p1767_p10 }
 0x3ac   : > { %p1774_p12 = por %p1773_p6, %p1772_p7 }
 0x3ae   : > { %p1775_p13 = pnand %p1774_p12, %p1768_p11 }
 0x3b0   : > { %1778 = shalt.err (!%p1775_p13)
}
 0x3b1   : > { %s1845_s19 = smov 128   ;;  %s1846_s16 = smov 8  }
 0x3b2   : > { %1440 = dma.vmem_to_hbm [thread:$0]  (%p2481_p9), %s2406_s20, 2048, %s2404_s13, %s1054_s30, %s1845_s19, %s1845_s19, %s1846_s16  }
 0x3b3 PF: > { %s1082_s17 = sand.u32 1, %s1817_s24   ;;  %p2482_p1 = scmp.ne.s32.totalorder %s2472_s15, 0 }
 0x3b4   : > { %p2483_p3 = scmp.ge.s32.totalorder %s1829_s27, 2  ;;  %s1083_s23 = scalar_lea.sflag [#allocation4], %s1082_s17 }
 0x3b6   : > { %p1466_p2 = pnand %p2483_p3, %p2482_p1 }
 0x3b8   : > { %1812 = dma.done.wait (!%p1466_p2), %s1083_s23, 2048  }
 0x3b9   : > { %1814 = vsyncadd (!%p1466_p2), %s1083_s23, 4294965248  ;;  %p23_p8 = scmp.ge.s32.totalorder %s2064_s11, 4   ;;  %s2484_s24 = smov %s1821_s25 }
 0x3ba   : > { %s2485_s25 = smov %s1825_s26  ;;  %s2486_s26 = smov %s2075_s28 }
 0x3bb   : > { %s2487_s27 = smov %s2064_s11  ;;  %25 = sbr.rel (!%p23_p8) target bundleno = 8 (0x8), region = 119 }
 0x3c2   :  { %1088 = vsyncpa [#allocation3], 1 }
 0x3c3   :  { %1090 = vsyncpa [#allocation3 + $0x1], 1 }
 0x3c4   :  { %1091 = vsyncpa [#allocation6], 1 }
 0x3c5   :  { %1092 = vsyncpa [#allocation9], 1 }
 0x3c6   :  { %1093 = vsyncpa [#allocation12], 1 }
 0x3c7   :  { %1094 = vsyncpa [#allocation4], 1 }
 0x3c8   :  { %1096 = vsyncpa [#allocation4 + $0x1], 1 }

</bundles_post_ra>
